<compile_context>
chip_gen: v7x
topology: tpu7x:2x2x1
jax: 0.10.0
libtpu: 0.0.40
codegen_flags: <defaults>
</compile_context>

<pallas_src>
import jax
import jax.numpy as jnp
from jax.experimental import pallas as pl
from jax.experimental.pallas import tpu as pltpu

HIDDEN = 32
LANE = 128          # lane width: batch elements map to lanes
TILE_ROWS = 512     # 512 x 128 f32 = 256 KiB per tile per buffer
NACC = 4            # independent partial accumulators (breaks vadd chain)


def mlp_kernel(w1_ref, b1_ref, w2_ref, b2_ref, x_ref, o_ref):
    # w1_ref, b1_ref, w2_ref : SMEM (HIDDEN,) f32   (scalar reads)
    # b2_ref                 : SMEM (1,) f32
    # x_ref, o_ref           : VMEM (tile_rows, LANE) f32, batch on lanes
    x = x_ref[...]
    accs = [jnp.zeros_like(x) for _ in range(NACC)]
    # Unrolled hidden loop: VPU mul/add + EUP sigmoid, scalar weights from
    # SMEM.  Round-robin over NACC accumulators for ILP.
    for j in range(HIDDEN):
        z = w1_ref[j] * x + b1_ref[j]
        accs[j % NACC] = accs[j % NACC] + w2_ref[j] * jax.nn.sigmoid(z)
    acc = accs[0]
    for k in range(1, NACC):
        acc = acc + accs[k]
    o_ref[...] = acc + b2_ref[0]


def mlp_forward(x, w1, b1, w2, b2, *, tile_rows=TILE_ROWS):
    """x: (B, 1) f32.  w1, b1, w2: (32,) f32.  b2: (1,) f32.  Returns (B, 1)."""
    B = x.shape[0]
    xf = x.reshape(-1).astype(jnp.float32)

    rows = pl.cdiv(B, LANE)
    if rows <= tile_rows:
        tr = rows                      # single tile == full array (any shape ok)
        rows_padded = rows
    else:
        tr = tile_rows                 # multiple of 8 -> (8,128)-aligned blocks
        rows_padded = pl.cdiv(rows, tr) * tr

    pad = rows_padded * LANE - B
    if pad:
        xf = jnp.pad(xf, (0, pad))     # padded lanes computed then discarded
    x2 = xf.reshape(rows_padded, LANE)

    out2 = pl.pallas_call(
        mlp_kernel,
        out_shape=jax.ShapeDtypeStruct((rows_padded, LANE), jnp.float32),
        grid=(rows_padded // tr,),
        in_specs=[
            pl.BlockSpec(memory_space=pltpu.MemorySpace.SMEM),   # w1 (32,)
            pl.BlockSpec(memory_space=pltpu.MemorySpace.SMEM),   # b1 (32,)
            pl.BlockSpec(memory_space=pltpu.MemorySpace.SMEM),   # w2 (32,)
            pl.BlockSpec(memory_space=pltpu.MemorySpace.SMEM),   # b2 (1,)
            pl.BlockSpec((tr, LANE), lambda i: (i, 0)),          # x tile
        ],
        out_specs=pl.BlockSpec((tr, LANE), lambda i: (i, 0)),
        compiler_params=pltpu.CompilerParams(
            dimension_semantics=("parallel",)),
    )(w1, b1, w2, b2, x2)

    return out2.reshape(-1)[:B].reshape(B, 1)


def init_params(key):
    # Mimic nn.Linear default init: uniform(-1/sqrt(fan_in), 1/sqrt(fan_in)).
    k1, k2, k3, k4 = jax.random.split(key, 4)
    bound1 = 1.0                                   # fc_1: fan_in = 1
    w1 = jax.random.uniform(k1, (HIDDEN,), jnp.float32, -bound1, bound1)
    b1 = jax.random.uniform(k2, (HIDDEN,), jnp.float32, -bound1, bound1)
    bound2 = 1.0 / float(jnp.sqrt(HIDDEN))         # fc_2: fan_in = 32
    w2 = jax.random.uniform(k3, (HIDDEN,), jnp.float32, -bound2, bound2)
    b2 = jax.random.uniform(k4, (1,), jnp.float32, -bound2, bound2)
    return w1, b1, w2, b2


def mlp_reference(x, w1, b1, w2, b2):
    # Pure-JAX reference matching the PyTorch module.
    h = jax.nn.sigmoid(x * w1[None, :] + b1[None, :])   # (B, 32)
    return h @ w2[:, None] + b2[None, :]                 # (B, 1)


if __name__ == "__main__":
    key = jax.random.PRNGKey(0)
    kx, kx2, kp = jax.random.split(key, 3)
    w1, b1, w2, b2 = init_params(kp)

    # Small primary check (B = 8, consistent with Linear(1, 32) forward).
    B = 8
    x = jax.random.normal(kx, (B, 1), jnp.float32)
    out = mlp_forward(x, w1, b1, w2, b2)
    jax.block_until_ready(out)
    ref = mlp_reference(x, w1, b1, w2, b2)
    assert out.shape == (B, 1)
    assert jnp.allclose(out, ref, atol=1e-5), "mismatch vs reference (B=8)"

    # Secondary check exercising the lane-dense padding path (B not a
    # multiple of 128).
    B2 = 200
    x2 = jax.random.normal(kx2, (B2, 1), jnp.float32)
    out2 = mlp_forward(x2, w1, b1, w2, b2)
    jax.block_until_ready(out2)
    ref2 = mlp_reference(x2, w1, b1, w2, b2)
    assert out2.shape == (B2, 1)
    assert jnp.allclose(out2, ref2, atol=1e-5), "mismatch vs reference (B=200)"

    print("KERNEL_OK")
</pallas_src>

<mosaic_0001>
module attributes {stable_mosaic.version = 11 : i64} {
  func.func @mlp_kernel(%arg0: i32, %arg1: memref<32xf32, #tpu.memory_space<smem>>, %arg2: memref<32xf32, #tpu.memory_space<smem>>, %arg3: memref<32xf32, #tpu.memory_space<smem>>, %arg4: memref<1xf32, #tpu.memory_space<smem>>, %arg5: memref<1x128xf32, #tpu.memory_space<vmem>>, %arg6: memref<1x128xf32, #tpu.memory_space<vmem>>) attributes {dimension_semantics = [#tpu.dimension_semantics<parallel>], iteration_bounds = array<i64: 1>, scalar_prefetch = 0 : i64, scratch_operands = 0 : i64, tpu.core_type = #tpu.core_type<tc>, window_params = [{transform_indices = @transform_0, window_bounds = array<i64: 32>}, {transform_indices = @transform_1, window_bounds = array<i64: 32>}, {transform_indices = @transform_2, window_bounds = array<i64: 32>}, {transform_indices = @transform_3, window_bounds = array<i64: 1>}, {transform_indices = @transform_4, window_bounds = array<i64: 1, 128>}, {transform_indices = @transform_5, window_bounds = array<i64: 1, 128>}]} {
    %c0 = arith.constant 0 : index
    %c0_0 = arith.constant 0 : index
    %0 = vector.load %arg5[%c0, %c0_0] : memref<1x128xf32, #tpu.memory_space<vmem>>, vector<1x128xf32>
    %cst = arith.constant 0.000000e+00 : f32
    %1 = vector.broadcast %cst : f32 to vector<1x128xf32>
    %cst_1 = arith.constant 0.000000e+00 : f32
    %2 = vector.broadcast %cst_1 : f32 to vector<1x128xf32>
    %cst_2 = arith.constant 0.000000e+00 : f32
    %3 = vector.broadcast %cst_2 : f32 to vector<1x128xf32>
    %cst_3 = arith.constant 0.000000e+00 : f32
    %4 = vector.broadcast %cst_3 : f32 to vector<1x128xf32>
    %c0_4 = arith.constant 0 : index
    %5 = memref.load %arg1[%c0_4] : memref<32xf32, #tpu.memory_space<smem>>
    %6 = vector.broadcast %5 : f32 to vector<1x128xf32>
    %7 = arith.mulf %6, %0 : vector<1x128xf32>
    %c0_5 = arith.constant 0 : index
    %8 = memref.load %arg2[%c0_5] : memref<32xf32, #tpu.memory_space<smem>>
    %9 = vector.broadcast %8 : f32 to vector<1x128xf32>
    %10 = arith.addf %7, %9 : vector<1x128xf32>
    %c0_6 = arith.constant 0 : index
    %11 = memref.load %arg3[%c0_6] : memref<32xf32, #tpu.memory_space<smem>>
    %12 = arith.negf %10 : vector<1x128xf32>
    %13 = math.exp %12 : vector<1x128xf32>
    %cst_7 = arith.constant 1.000000e+00 : f32
    %14 = vector.broadcast %cst_7 : f32 to vector<1x128xf32>
    %15 = arith.addf %14, %13 : vector<1x128xf32>
    %16 = arith.divf %14, %15 : vector<1x128xf32>
    %17 = vector.broadcast %11 : f32 to vector<1x128xf32>
    %18 = arith.mulf %17, %16 : vector<1x128xf32>
    %19 = arith.addf %1, %18 : vector<1x128xf32>
    %c1 = arith.constant 1 : index
    %20 = memref.load %arg1[%c1] : memref<32xf32, #tpu.memory_space<smem>>
    %21 = vector.broadcast %20 : f32 to vector<1x128xf32>
    %22 = arith.mulf %21, %0 : vector<1x128xf32>
    %c1_8 = arith.constant 1 : index
    %23 = memref.load %arg2[%c1_8] : memref<32xf32, #tpu.memory_space<smem>>
    %24 = vector.broadcast %23 : f32 to vector<1x128xf32>
    %25 = arith.addf %22, %24 : vector<1x128xf32>
    %c1_9 = arith.constant 1 : index
    %26 = memref.load %arg3[%c1_9] : memref<32xf32, #tpu.memory_space<smem>>
    %27 = arith.negf %25 : vector<1x128xf32>
    %28 = math.exp %27 : vector<1x128xf32>
    %cst_10 = arith.constant 1.000000e+00 : f32
    %29 = vector.broadcast %cst_10 : f32 to vector<1x128xf32>
    %30 = arith.addf %29, %28 : vector<1x128xf32>
    %31 = arith.divf %29, %30 : vector<1x128xf32>
    %32 = vector.broadcast %26 : f32 to vector<1x128xf32>
    %33 = arith.mulf %32, %31 : vector<1x128xf32>
    %34 = arith.addf %2, %33 : vector<1x128xf32>
    %c2 = arith.constant 2 : index
    %35 = memref.load %arg1[%c2] : memref<32xf32, #tpu.memory_space<smem>>
    %36 = vector.broadcast %35 : f32 to vector<1x128xf32>
    %37 = arith.mulf %36, %0 : vector<1x128xf32>
    %c2_11 = arith.constant 2 : index
    %38 = memref.load %arg2[%c2_11] : memref<32xf32, #tpu.memory_space<smem>>
    %39 = vector.broadcast %38 : f32 to vector<1x128xf32>
    %40 = arith.addf %37, %39 : vector<1x128xf32>
    %c2_12 = arith.constant 2 : index
    %41 = memref.load %arg3[%c2_12] : memref<32xf32, #tpu.memory_space<smem>>
    %42 = arith.negf %40 : vector<1x128xf32>
    %43 = math.exp %42 : vector<1x128xf32>
    %cst_13 = arith.constant 1.000000e+00 : f32
    %44 = vector.broadcast %cst_13 : f32 to vector<1x128xf32>
    %45 = arith.addf %44, %43 : vector<1x128xf32>
    %46 = arith.divf %44, %45 : vector<1x128xf32>
    %47 = vector.broadcast %41 : f32 to vector<1x128xf32>
    %48 = arith.mulf %47, %46 : vector<1x128xf32>
    %49 = arith.addf %3, %48 : vector<1x128xf32>
    %c3 = arith.constant 3 : index
    %50 = memref.load %arg1[%c3] : memref<32xf32, #tpu.memory_space<smem>>
    %51 = vector.broadcast %50 : f32 to vector<1x128xf32>
    %52 = arith.mulf %51, %0 : vector<1x128xf32>
    %c3_14 = arith.constant 3 : index
    %53 = memref.load %arg2[%c3_14] : memref<32xf32, #tpu.memory_space<smem>>
    %54 = vector.broadcast %53 : f32 to vector<1x128xf32>
    %55 = arith.addf %52, %54 : vector<1x128xf32>
    %c3_15 = arith.constant 3 : index
    %56 = memref.load %arg3[%c3_15] : memref<32xf32, #tpu.memory_space<smem>>
    %57 = arith.negf %55 : vector<1x128xf32>
    %58 = math.exp %57 : vector<1x128xf32>
    %cst_16 = arith.constant 1.000000e+00 : f32
    %59 = vector.broadcast %cst_16 : f32 to vector<1x128xf32>
    %60 = arith.addf %59, %58 : vector<1x128xf32>
    %61 = arith.divf %59, %60 : vector<1x128xf32>
    %62 = vector.broadcast %56 : f32 to vector<1x128xf32>
    %63 = arith.mulf %62, %61 : vector<1x128xf32>
    %64 = arith.addf %4, %63 : vector<1x128xf32>
    %c4 = arith.constant 4 : index
    %65 = memref.load %arg1[%c4] : memref<32xf32, #tpu.memory_space<smem>>
    %66 = vector.broadcast %65 : f32 to vector<1x128xf32>
    %67 = arith.mulf %66, %0 : vector<1x128xf32>
    %c4_17 = arith.constant 4 : index
    %68 = memref.load %arg2[%c4_17] : memref<32xf32, #tpu.memory_space<smem>>
    %69 = vector.broadcast %68 : f32 to vector<1x128xf32>
    %70 = arith.addf %67, %69 : vector<1x128xf32>
    %c4_18 = arith.constant 4 : index
    %71 = memref.load %arg3[%c4_18] : memref<32xf32, #tpu.memory_space<smem>>
    %72 = arith.negf %70 : vector<1x128xf32>
    %73 = math.exp %72 : vector<1x128xf32>
    %cst_19 = arith.constant 1.000000e+00 : f32
    %74 = vector.broadcast %cst_19 : f32 to vector<1x128xf32>
    %75 = arith.addf %74, %73 : vector<1x128xf32>
    %76 = arith.divf %74, %75 : vector<1x128xf32>
    %77 = vector.broadcast %71 : f32 to vector<1x128xf32>
    %78 = arith.mulf %77, %76 : vector<1x128xf32>
    %79 = arith.addf %19, %78 : vector<1x128xf32>
    %c5 = arith.constant 5 : index
    %80 = memref.load %arg1[%c5] : memref<32xf32, #tpu.memory_space<smem>>
    %81 = vector.broadcast %80 : f32 to vector<1x128xf32>
    %82 = arith.mulf %81, %0 : vector<1x128xf32>
    %c5_20 = arith.constant 5 : index
    %83 = memref.load %arg2[%c5_20] : memref<32xf32, #tpu.memory_space<smem>>
    %84 = vector.broadcast %83 : f32 to vector<1x128xf32>
    %85 = arith.addf %82, %84 : vector<1x128xf32>
    %c5_21 = arith.constant 5 : index
    %86 = memref.load %arg3[%c5_21] : memref<32xf32, #tpu.memory_space<smem>>
    %87 = arith.negf %85 : vector<1x128xf32>
    %88 = math.exp %87 : vector<1x128xf32>
    %cst_22 = arith.constant 1.000000e+00 : f32
    %89 = vector.broadcast %cst_22 : f32 to vector<1x128xf32>
    %90 = arith.addf %89, %88 : vector<1x128xf32>
    %91 = arith.divf %89, %90 : vector<1x128xf32>
    %92 = vector.broadcast %86 : f32 to vector<1x128xf32>
    %93 = arith.mulf %92, %91 : vector<1x128xf32>
    %94 = arith.addf %34, %93 : vector<1x128xf32>
    %c6 = arith.constant 6 : index
    %95 = memref.load %arg1[%c6] : memref<32xf32, #tpu.memory_space<smem>>
    %96 = vector.broadcast %95 : f32 to vector<1x128xf32>
    %97 = arith.mulf %96, %0 : vector<1x128xf32>
    %c6_23 = arith.constant 6 : index
    %98 = memref.load %arg2[%c6_23] : memref<32xf32, #tpu.memory_space<smem>>
    %99 = vector.broadcast %98 : f32 to vector<1x128xf32>
    %100 = arith.addf %97, %99 : vector<1x128xf32>
    %c6_24 = arith.constant 6 : index
    %101 = memref.load %arg3[%c6_24] : memref<32xf32, #tpu.memory_space<smem>>
    %102 = arith.negf %100 : vector<1x128xf32>
    %103 = math.exp %102 : vector<1x128xf32>
    %cst_25 = arith.constant 1.000000e+00 : f32
    %104 = vector.broadcast %cst_25 : f32 to vector<1x128xf32>
    %105 = arith.addf %104, %103 : vector<1x128xf32>
    %106 = arith.divf %104, %105 : vector<1x128xf32>
    %107 = vector.broadcast %101 : f32 to vector<1x128xf32>
    %108 = arith.mulf %107, %106 : vector<1x128xf32>
    %109 = arith.addf %49, %108 : vector<1x128xf32>
    %c7 = arith.constant 7 : index
    %110 = memref.load %arg1[%c7] : memref<32xf32, #tpu.memory_space<smem>>
    %111 = vector.broadcast %110 : f32 to vector<1x128xf32>
    %112 = arith.mulf %111, %0 : vector<1x128xf32>
    %c7_26 = arith.constant 7 : index
    %113 = memref.load %arg2[%c7_26] : memref<32xf32, #tpu.memory_space<smem>>
    %114 = vector.broadcast %113 : f32 to vector<1x128xf32>
    %115 = arith.addf %112, %114 : vector<1x128xf32>
    %c7_27 = arith.constant 7 : index
    %116 = memref.load %arg3[%c7_27] : memref<32xf32, #tpu.memory_space<smem>>
    %117 = arith.negf %115 : vector<1x128xf32>
    %118 = math.exp %117 : vector<1x128xf32>
    %cst_28 = arith.constant 1.000000e+00 : f32
    %119 = vector.broadcast %cst_28 : f32 to vector<1x128xf32>
    %120 = arith.addf %119, %118 : vector<1x128xf32>
    %121 = arith.divf %119, %120 : vector<1x128xf32>
    %122 = vector.broadcast %116 : f32 to vector<1x128xf32>
    %123 = arith.mulf %122, %121 : vector<1x128xf32>
    %124 = arith.addf %64, %123 : vector<1x128xf32>
    %c8 = arith.constant 8 : index
    %125 = memref.load %arg1[%c8] : memref<32xf32, #tpu.memory_space<smem>>
    %126 = vector.broadcast %125 : f32 to vector<1x128xf32>
    %127 = arith.mulf %126, %0 : vector<1x128xf32>
    %c8_29 = arith.constant 8 : index
    %128 = memref.load %arg2[%c8_29] : memref<32xf32, #tpu.memory_space<smem>>
    %129 = vector.broadcast %128 : f32 to vector<1x128xf32>
    %130 = arith.addf %127, %129 : vector<1x128xf32>
    %c8_30 = arith.constant 8 : index
    %131 = memref.load %arg3[%c8_30] : memref<32xf32, #tpu.memory_space<smem>>
    %132 = arith.negf %130 : vector<1x128xf32>
    %133 = math.exp %132 : vector<1x128xf32>
    %cst_31 = arith.constant 1.000000e+00 : f32
    %134 = vector.broadcast %cst_31 : f32 to vector<1x128xf32>
    %135 = arith.addf %134, %133 : vector<1x128xf32>
    %136 = arith.divf %134, %135 : vector<1x128xf32>
    %137 = vector.broadcast %131 : f32 to vector<1x128xf32>
    %138 = arith.mulf %137, %136 : vector<1x128xf32>
    %139 = arith.addf %79, %138 : vector<1x128xf32>
    %c9 = arith.constant 9 : index
    %140 = memref.load %arg1[%c9] : memref<32xf32, #tpu.memory_space<smem>>
    %141 = vector.broadcast %140 : f32 to vector<1x128xf32>
    %142 = arith.mulf %141, %0 : vector<1x128xf32>
    %c9_32 = arith.constant 9 : index
    %143 = memref.load %arg2[%c9_32] : memref<32xf32, #tpu.memory_space<smem>>
    %144 = vector.broadcast %143 : f32 to vector<1x128xf32>
    %145 = arith.addf %142, %144 : vector<1x128xf32>
    %c9_33 = arith.constant 9 : index
    %146 = memref.load %arg3[%c9_33] : memref<32xf32, #tpu.memory_space<smem>>
    %147 = arith.negf %145 : vector<1x128xf32>
    %148 = math.exp %147 : vector<1x128xf32>
    %cst_34 = arith.constant 1.000000e+00 : f32
    %149 = vector.broadcast %cst_34 : f32 to vector<1x128xf32>
    %150 = arith.addf %149, %148 : vector<1x128xf32>
    %151 = arith.divf %149, %150 : vector<1x128xf32>
    %152 = vector.broadcast %146 : f32 to vector<1x128xf32>
    %153 = arith.mulf %152, %151 : vector<1x128xf32>
    %154 = arith.addf %94, %153 : vector<1x128xf32>
    %c10 = arith.constant 10 : index
    %155 = memref.load %arg1[%c10] : memref<32xf32, #tpu.memory_space<smem>>
    %156 = vector.broadcast %155 : f32 to vector<1x128xf32>
    %157 = arith.mulf %156, %0 : vector<1x128xf32>
    %c10_35 = arith.constant 10 : index
    %158 = memref.load %arg2[%c10_35] : memref<32xf32, #tpu.memory_space<smem>>
    %159 = vector.broadcast %158 : f32 to vector<1x128xf32>
    %160 = arith.addf %157, %159 : vector<1x128xf32>
    %c10_36 = arith.constant 10 : index
    %161 = memref.load %arg3[%c10_36] : memref<32xf32, #tpu.memory_space<smem>>
    %162 = arith.negf %160 : vector<1x128xf32>
    %163 = math.exp %162 : vector<1x128xf32>
    %cst_37 = arith.constant 1.000000e+00 : f32
    %164 = vector.broadcast %cst_37 : f32 to vector<1x128xf32>
    %165 = arith.addf %164, %163 : vector<1x128xf32>
    %166 = arith.divf %164, %165 : vector<1x128xf32>
    %167 = vector.broadcast %161 : f32 to vector<1x128xf32>
    %168 = arith.mulf %167, %166 : vector<1x128xf32>
    %169 = arith.addf %109, %168 : vector<1x128xf32>
    %c11 = arith.constant 11 : index
    %170 = memref.load %arg1[%c11] : memref<32xf32, #tpu.memory_space<smem>>
    %171 = vector.broadcast %170 : f32 to vector<1x128xf32>
    %172 = arith.mulf %171, %0 : vector<1x128xf32>
    %c11_38 = arith.constant 11 : index
    %173 = memref.load %arg2[%c11_38] : memref<32xf32, #tpu.memory_space<smem>>
    %174 = vector.broadcast %173 : f32 to vector<1x128xf32>
    %175 = arith.addf %172, %174 : vector<1x128xf32>
    %c11_39 = arith.constant 11 : index
    %176 = memref.load %arg3[%c11_39] : memref<32xf32, #tpu.memory_space<smem>>
    %177 = arith.negf %175 : vector<1x128xf32>
    %178 = math.exp %177 : vector<1x128xf32>
    %cst_40 = arith.constant 1.000000e+00 : f32
    %179 = vector.broadcast %cst_40 : f32 to vector<1x128xf32>
    %180 = arith.addf %179, %178 : vector<1x128xf32>
    %181 = arith.divf %179, %180 : vector<1x128xf32>
    %182 = vector.broadcast %176 : f32 to vector<1x128xf32>
    %183 = arith.mulf %182, %181 : vector<1x128xf32>
    %184 = arith.addf %124, %183 : vector<1x128xf32>
    %c12 = arith.constant 12 : index
    %185 = memref.load %arg1[%c12] : memref<32xf32, #tpu.memory_space<smem>>
    %186 = vector.broadcast %185 : f32 to vector<1x128xf32>
    %187 = arith.mulf %186, %0 : vector<1x128xf32>
    %c12_41 = arith.constant 12 : index
    %188 = memref.load %arg2[%c12_41] : memref<32xf32, #tpu.memory_space<smem>>
    %189 = vector.broadcast %188 : f32 to vector<1x128xf32>
    %190 = arith.addf %187, %189 : vector<1x128xf32>
    %c12_42 = arith.constant 12 : index
    %191 = memref.load %arg3[%c12_42] : memref<32xf32, #tpu.memory_space<smem>>
    %192 = arith.negf %190 : vector<1x128xf32>
    %193 = math.exp %192 : vector<1x128xf32>
    %cst_43 = arith.constant 1.000000e+00 : f32
    %194 = vector.broadcast %cst_43 : f32 to vector<1x128xf32>
    %195 = arith.addf %194, %193 : vector<1x128xf32>
    %196 = arith.divf %194, %195 : vector<1x128xf32>
    %197 = vector.broadcast %191 : f32 to vector<1x128xf32>
    %198 = arith.mulf %197, %196 : vector<1x128xf32>
    %199 = arith.addf %139, %198 : vector<1x128xf32>
    %c13 = arith.constant 13 : index
    %200 = memref.load %arg1[%c13] : memref<32xf32, #tpu.memory_space<smem>>
    %201 = vector.broadcast %200 : f32 to vector<1x128xf32>
    %202 = arith.mulf %201, %0 : vector<1x128xf32>
    %c13_44 = arith.constant 13 : index
    %203 = memref.load %arg2[%c13_44] : memref<32xf32, #tpu.memory_space<smem>>
    %204 = vector.broadcast %203 : f32 to vector<1x128xf32>
    %205 = arith.addf %202, %204 : vector<1x128xf32>
    %c13_45 = arith.constant 13 : index
    %206 = memref.load %arg3[%c13_45] : memref<32xf32, #tpu.memory_space<smem>>
    %207 = arith.negf %205 : vector<1x128xf32>
    %208 = math.exp %207 : vector<1x128xf32>
    %cst_46 = arith.constant 1.000000e+00 : f32
    %209 = vector.broadcast %cst_46 : f32 to vector<1x128xf32>
    %210 = arith.addf %209, %208 : vector<1x128xf32>
    %211 = arith.divf %209, %210 : vector<1x128xf32>
    %212 = vector.broadcast %206 : f32 to vector<1x128xf32>
    %213 = arith.mulf %212, %211 : vector<1x128xf32>
    %214 = arith.addf %154, %213 : vector<1x128xf32>
    %c14 = arith.constant 14 : index
    %215 = memref.load %arg1[%c14] : memref<32xf32, #tpu.memory_space<smem>>
    %216 = vector.broadcast %215 : f32 to vector<1x128xf32>
    %217 = arith.mulf %216, %0 : vector<1x128xf32>
    %c14_47 = arith.constant 14 : index
    %218 = memref.load %arg2[%c14_47] : memref<32xf32, #tpu.memory_space<smem>>
    %219 = vector.broadcast %218 : f32 to vector<1x128xf32>
    %220 = arith.addf %217, %219 : vector<1x128xf32>
    %c14_48 = arith.constant 14 : index
    %221 = memref.load %arg3[%c14_48] : memref<32xf32, #tpu.memory_space<smem>>
    %222 = arith.negf %220 : vector<1x128xf32>
    %223 = math.exp %222 : vector<1x128xf32>
    %cst_49 = arith.constant 1.000000e+00 : f32
    %224 = vector.broadcast %cst_49 : f32 to vector<1x128xf32>
    %225 = arith.addf %224, %223 : vector<1x128xf32>
    %226 = arith.divf %224, %225 : vector<1x128xf32>
    %227 = vector.broadcast %221 : f32 to vector<1x128xf32>
    %228 = arith.mulf %227, %226 : vector<1x128xf32>
    %229 = arith.addf %169, %228 : vector<1x128xf32>
    %c15 = arith.constant 15 : index
    %230 = memref.load %arg1[%c15] : memref<32xf32, #tpu.memory_space<smem>>
    %231 = vector.broadcast %230 : f32 to vector<1x128xf32>
    %232 = arith.mulf %231, %0 : vector<1x128xf32>
    %c15_50 = arith.constant 15 : index
    %233 = memref.load %arg2[%c15_50] : memref<32xf32, #tpu.memory_space<smem>>
    %234 = vector.broadcast %233 : f32 to vector<1x128xf32>
    %235 = arith.addf %232, %234 : vector<1x128xf32>
    %c15_51 = arith.constant 15 : index
    %236 = memref.load %arg3[%c15_51] : memref<32xf32, #tpu.memory_space<smem>>
    %237 = arith.negf %235 : vector<1x128xf32>
    %238 = math.exp %237 : vector<1x128xf32>
    %cst_52 = arith.constant 1.000000e+00 : f32
    %239 = vector.broadcast %cst_52 : f32 to vector<1x128xf32>
    %240 = arith.addf %239, %238 : vector<1x128xf32>
    %241 = arith.divf %239, %240 : vector<1x128xf32>
    %242 = vector.broadcast %236 : f32 to vector<1x128xf32>
    %243 = arith.mulf %242, %241 : vector<1x128xf32>
    %244 = arith.addf %184, %243 : vector<1x128xf32>
    %c16 = arith.constant 16 : index
    %245 = memref.load %arg1[%c16] : memref<32xf32, #tpu.memory_space<smem>>
    %246 = vector.broadcast %245 : f32 to vector<1x128xf32>
    %247 = arith.mulf %246, %0 : vector<1x128xf32>
    %c16_53 = arith.constant 16 : index
    %248 = memref.load %arg2[%c16_53] : memref<32xf32, #tpu.memory_space<smem>>
    %249 = vector.broadcast %248 : f32 to vector<1x128xf32>
    %250 = arith.addf %247, %249 : vector<1x128xf32>
    %c16_54 = arith.constant 16 : index
    %251 = memref.load %arg3[%c16_54] : memref<32xf32, #tpu.memory_space<smem>>
    %252 = arith.negf %250 : vector<1x128xf32>
    %253 = math.exp %252 : vector<1x128xf32>
    %cst_55 = arith.constant 1.000000e+00 : f32
    %254 = vector.broadcast %cst_55 : f32 to vector<1x128xf32>
    %255 = arith.addf %254, %253 : vector<1x128xf32>
    %256 = arith.divf %254, %255 : vector<1x128xf32>
    %257 = vector.broadcast %251 : f32 to vector<1x128xf32>
    %258 = arith.mulf %257, %256 : vector<1x128xf32>
    %259 = arith.addf %199, %258 : vector<1x128xf32>
    %c17 = arith.constant 17 : index
    %260 = memref.load %arg1[%c17] : memref<32xf32, #tpu.memory_space<smem>>
    %261 = vector.broadcast %260 : f32 to vector<1x128xf32>
    %262 = arith.mulf %261, %0 : vector<1x128xf32>
    %c17_56 = arith.constant 17 : index
    %263 = memref.load %arg2[%c17_56] : memref<32xf32, #tpu.memory_space<smem>>
    %264 = vector.broadcast %263 : f32 to vector<1x128xf32>
    %265 = arith.addf %262, %264 : vector<1x128xf32>
    %c17_57 = arith.constant 17 : index
    %266 = memref.load %arg3[%c17_57] : memref<32xf32, #tpu.memory_space<smem>>
    %267 = arith.negf %265 : vector<1x128xf32>
    %268 = math.exp %267 : vector<1x128xf32>
    %cst_58 = arith.constant 1.000000e+00 : f32
    %269 = vector.broadcast %cst_58 : f32 to vector<1x128xf32>
    %270 = arith.addf %269, %268 : vector<1x128xf32>
    %271 = arith.divf %269, %270 : vector<1x128xf32>
    %272 = vector.broadcast %266 : f32 to vector<1x128xf32>
    %273 = arith.mulf %272, %271 : vector<1x128xf32>
    %274 = arith.addf %214, %273 : vector<1x128xf32>
    %c18 = arith.constant 18 : index
    %275 = memref.load %arg1[%c18] : memref<32xf32, #tpu.memory_space<smem>>
    %276 = vector.broadcast %275 : f32 to vector<1x128xf32>
    %277 = arith.mulf %276, %0 : vector<1x128xf32>
    %c18_59 = arith.constant 18 : index
    %278 = memref.load %arg2[%c18_59] : memref<32xf32, #tpu.memory_space<smem>>
    %279 = vector.broadcast %278 : f32 to vector<1x128xf32>
    %280 = arith.addf %277, %279 : vector<1x128xf32>
    %c18_60 = arith.constant 18 : index
    %281 = memref.load %arg3[%c18_60] : memref<32xf32, #tpu.memory_space<smem>>
    %282 = arith.negf %280 : vector<1x128xf32>
    %283 = math.exp %282 : vector<1x128xf32>
    %cst_61 = arith.constant 1.000000e+00 : f32
    %284 = vector.broadcast %cst_61 : f32 to vector<1x128xf32>
    %285 = arith.addf %284, %283 : vector<1x128xf32>
    %286 = arith.divf %284, %285 : vector<1x128xf32>
    %287 = vector.broadcast %281 : f32 to vector<1x128xf32>
    %288 = arith.mulf %287, %286 : vector<1x128xf32>
    %289 = arith.addf %229, %288 : vector<1x128xf32>
    %c19 = arith.constant 19 : index
    %290 = memref.load %arg1[%c19] : memref<32xf32, #tpu.memory_space<smem>>
    %291 = vector.broadcast %290 : f32 to vector<1x128xf32>
    %292 = arith.mulf %291, %0 : vector<1x128xf32>
    %c19_62 = arith.constant 19 : index
    %293 = memref.load %arg2[%c19_62] : memref<32xf32, #tpu.memory_space<smem>>
    %294 = vector.broadcast %293 : f32 to vector<1x128xf32>
    %295 = arith.addf %292, %294 : vector<1x128xf32>
    %c19_63 = arith.constant 19 : index
    %296 = memref.load %arg3[%c19_63] : memref<32xf32, #tpu.memory_space<smem>>
    %297 = arith.negf %295 : vector<1x128xf32>
    %298 = math.exp %297 : vector<1x128xf32>
    %cst_64 = arith.constant 1.000000e+00 : f32
    %299 = vector.broadcast %cst_64 : f32 to vector<1x128xf32>
    %300 = arith.addf %299, %298 : vector<1x128xf32>
    %301 = arith.divf %299, %300 : vector<1x128xf32>
    %302 = vector.broadcast %296 : f32 to vector<1x128xf32>
    %303 = arith.mulf %302, %301 : vector<1x128xf32>
    %304 = arith.addf %244, %303 : vector<1x128xf32>
    %c20 = arith.constant 20 : index
    %305 = memref.load %arg1[%c20] : memref<32xf32, #tpu.memory_space<smem>>
    %306 = vector.broadcast %305 : f32 to vector<1x128xf32>
    %307 = arith.mulf %306, %0 : vector<1x128xf32>
    %c20_65 = arith.constant 20 : index
    %308 = memref.load %arg2[%c20_65] : memref<32xf32, #tpu.memory_space<smem>>
    %309 = vector.broadcast %308 : f32 to vector<1x128xf32>
    %310 = arith.addf %307, %309 : vector<1x128xf32>
    %c20_66 = arith.constant 20 : index
    %311 = memref.load %arg3[%c20_66] : memref<32xf32, #tpu.memory_space<smem>>
    %312 = arith.negf %310 : vector<1x128xf32>
    %313 = math.exp %312 : vector<1x128xf32>
    %cst_67 = arith.constant 1.000000e+00 : f32
    %314 = vector.broadcast %cst_67 : f32 to vector<1x128xf32>
    %315 = arith.addf %314, %313 : vector<1x128xf32>
    %316 = arith.divf %314, %315 : vector<1x128xf32>
    %317 = vector.broadcast %311 : f32 to vector<1x128xf32>
    %318 = arith.mulf %317, %316 : vector<1x128xf32>
    %319 = arith.addf %259, %318 : vector<1x128xf32>
    %c21 = arith.constant 21 : index
    %320 = memref.load %arg1[%c21] : memref<32xf32, #tpu.memory_space<smem>>
    %321 = vector.broadcast %320 : f32 to vector<1x128xf32>
    %322 = arith.mulf %321, %0 : vector<1x128xf32>
    %c21_68 = arith.constant 21 : index
    %323 = memref.load %arg2[%c21_68] : memref<32xf32, #tpu.memory_space<smem>>
    %324 = vector.broadcast %323 : f32 to vector<1x128xf32>
    %325 = arith.addf %322, %324 : vector<1x128xf32>
    %c21_69 = arith.constant 21 : index
    %326 = memref.load %arg3[%c21_69] : memref<32xf32, #tpu.memory_space<smem>>
    %327 = arith.negf %325 : vector<1x128xf32>
    %328 = math.exp %327 : vector<1x128xf32>
    %cst_70 = arith.constant 1.000000e+00 : f32
    %329 = vector.broadcast %cst_70 : f32 to vector<1x128xf32>
    %330 = arith.addf %329, %328 : vector<1x128xf32>
    %331 = arith.divf %329, %330 : vector<1x128xf32>
    %332 = vector.broadcast %326 : f32 to vector<1x128xf32>
    %333 = arith.mulf %332, %331 : vector<1x128xf32>
    %334 = arith.addf %274, %333 : vector<1x128xf32>
    %c22 = arith.constant 22 : index
    %335 = memref.load %arg1[%c22] : memref<32xf32, #tpu.memory_space<smem>>
    %336 = vector.broadcast %335 : f32 to vector<1x128xf32>
    %337 = arith.mulf %336, %0 : vector<1x128xf32>
    %c22_71 = arith.constant 22 : index
    %338 = memref.load %arg2[%c22_71] : memref<32xf32, #tpu.memory_space<smem>>
    %339 = vector.broadcast %338 : f32 to vector<1x128xf32>
    %340 = arith.addf %337, %339 : vector<1x128xf32>
    %c22_72 = arith.constant 22 : index
    %341 = memref.load %arg3[%c22_72] : memref<32xf32, #tpu.memory_space<smem>>
    %342 = arith.negf %340 : vector<1x128xf32>
    %343 = math.exp %342 : vector<1x128xf32>
    %cst_73 = arith.constant 1.000000e+00 : f32
    %344 = vector.broadcast %cst_73 : f32 to vector<1x128xf32>
    %345 = arith.addf %344, %343 : vector<1x128xf32>
    %346 = arith.divf %344, %345 : vector<1x128xf32>
    %347 = vector.broadcast %341 : f32 to vector<1x128xf32>
    %348 = arith.mulf %347, %346 : vector<1x128xf32>
    %349 = arith.addf %289, %348 : vector<1x128xf32>
    %c23 = arith.constant 23 : index
    %350 = memref.load %arg1[%c23] : memref<32xf32, #tpu.memory_space<smem>>
    %351 = vector.broadcast %350 : f32 to vector<1x128xf32>
    %352 = arith.mulf %351, %0 : vector<1x128xf32>
    %c23_74 = arith.constant 23 : index
    %353 = memref.load %arg2[%c23_74] : memref<32xf32, #tpu.memory_space<smem>>
    %354 = vector.broadcast %353 : f32 to vector<1x128xf32>
    %355 = arith.addf %352, %354 : vector<1x128xf32>
    %c23_75 = arith.constant 23 : index
    %356 = memref.load %arg3[%c23_75] : memref<32xf32, #tpu.memory_space<smem>>
    %357 = arith.negf %355 : vector<1x128xf32>
    %358 = math.exp %357 : vector<1x128xf32>
    %cst_76 = arith.constant 1.000000e+00 : f32
    %359 = vector.broadcast %cst_76 : f32 to vector<1x128xf32>
    %360 = arith.addf %359, %358 : vector<1x128xf32>
    %361 = arith.divf %359, %360 : vector<1x128xf32>
    %362 = vector.broadcast %356 : f32 to vector<1x128xf32>
    %363 = arith.mulf %362, %361 : vector<1x128xf32>
    %364 = arith.addf %304, %363 : vector<1x128xf32>
    %c24 = arith.constant 24 : index
    %365 = memref.load %arg1[%c24] : memref<32xf32, #tpu.memory_space<smem>>
    %366 = vector.broadcast %365 : f32 to vector<1x128xf32>
    %367 = arith.mulf %366, %0 : vector<1x128xf32>
    %c24_77 = arith.constant 24 : index
    %368 = memref.load %arg2[%c24_77] : memref<32xf32, #tpu.memory_space<smem>>
    %369 = vector.broadcast %368 : f32 to vector<1x128xf32>
    %370 = arith.addf %367, %369 : vector<1x128xf32>
    %c24_78 = arith.constant 24 : index
    %371 = memref.load %arg3[%c24_78] : memref<32xf32, #tpu.memory_space<smem>>
    %372 = arith.negf %370 : vector<1x128xf32>
    %373 = math.exp %372 : vector<1x128xf32>
    %cst_79 = arith.constant 1.000000e+00 : f32
    %374 = vector.broadcast %cst_79 : f32 to vector<1x128xf32>
    %375 = arith.addf %374, %373 : vector<1x128xf32>
    %376 = arith.divf %374, %375 : vector<1x128xf32>
    %377 = vector.broadcast %371 : f32 to vector<1x128xf32>
    %378 = arith.mulf %377, %376 : vector<1x128xf32>
    %379 = arith.addf %319, %378 : vector<1x128xf32>
    %c25 = arith.constant 25 : index
    %380 = memref.load %arg1[%c25] : memref<32xf32, #tpu.memory_space<smem>>
    %381 = vector.broadcast %380 : f32 to vector<1x128xf32>
    %382 = arith.mulf %381, %0 : vector<1x128xf32>
    %c25_80 = arith.constant 25 : index
    %383 = memref.load %arg2[%c25_80] : memref<32xf32, #tpu.memory_space<smem>>
    %384 = vector.broadcast %383 : f32 to vector<1x128xf32>
    %385 = arith.addf %382, %384 : vector<1x128xf32>
    %c25_81 = arith.constant 25 : index
    %386 = memref.load %arg3[%c25_81] : memref<32xf32, #tpu.memory_space<smem>>
    %387 = arith.negf %385 : vector<1x128xf32>
    %388 = math.exp %387 : vector<1x128xf32>
    %cst_82 = arith.constant 1.000000e+00 : f32
    %389 = vector.broadcast %cst_82 : f32 to vector<1x128xf32>
    %390 = arith.addf %389, %388 : vector<1x128xf32>
    %391 = arith.divf %389, %390 : vector<1x128xf32>
    %392 = vector.broadcast %386 : f32 to vector<1x128xf32>
    %393 = arith.mulf %392, %391 : vector<1x128xf32>
    %394 = arith.addf %334, %393 : vector<1x128xf32>
    %c26 = arith.constant 26 : index
    %395 = memref.load %arg1[%c26] : memref<32xf32, #tpu.memory_space<smem>>
    %396 = vector.broadcast %395 : f32 to vector<1x128xf32>
    %397 = arith.mulf %396, %0 : vector<1x128xf32>
    %c26_83 = arith.constant 26 : index
    %398 = memref.load %arg2[%c26_83] : memref<32xf32, #tpu.memory_space<smem>>
    %399 = vector.broadcast %398 : f32 to vector<1x128xf32>
    %400 = arith.addf %397, %399 : vector<1x128xf32>
    %c26_84 = arith.constant 26 : index
    %401 = memref.load %arg3[%c26_84] : memref<32xf32, #tpu.memory_space<smem>>
    %402 = arith.negf %400 : vector<1x128xf32>
    %403 = math.exp %402 : vector<1x128xf32>
    %cst_85 = arith.constant 1.000000e+00 : f32
    %404 = vector.broadcast %cst_85 : f32 to vector<1x128xf32>
    %405 = arith.addf %404, %403 : vector<1x128xf32>
    %406 = arith.divf %404, %405 : vector<1x128xf32>
    %407 = vector.broadcast %401 : f32 to vector<1x128xf32>
    %408 = arith.mulf %407, %406 : vector<1x128xf32>
    %409 = arith.addf %349, %408 : vector<1x128xf32>
    %c27 = arith.constant 27 : index
    %410 = memref.load %arg1[%c27] : memref<32xf32, #tpu.memory_space<smem>>
    %411 = vector.broadcast %410 : f32 to vector<1x128xf32>
    %412 = arith.mulf %411, %0 : vector<1x128xf32>
    %c27_86 = arith.constant 27 : index
    %413 = memref.load %arg2[%c27_86] : memref<32xf32, #tpu.memory_space<smem>>
    %414 = vector.broadcast %413 : f32 to vector<1x128xf32>
    %415 = arith.addf %412, %414 : vector<1x128xf32>
    %c27_87 = arith.constant 27 : index
    %416 = memref.load %arg3[%c27_87] : memref<32xf32, #tpu.memory_space<smem>>
    %417 = arith.negf %415 : vector<1x128xf32>
    %418 = math.exp %417 : vector<1x128xf32>
    %cst_88 = arith.constant 1.000000e+00 : f32
    %419 = vector.broadcast %cst_88 : f32 to vector<1x128xf32>
    %420 = arith.addf %419, %418 : vector<1x128xf32>
    %421 = arith.divf %419, %420 : vector<1x128xf32>
    %422 = vector.broadcast %416 : f32 to vector<1x128xf32>
    %423 = arith.mulf %422, %421 : vector<1x128xf32>
    %424 = arith.addf %364, %423 : vector<1x128xf32>
    %c28 = arith.constant 28 : index
    %425 = memref.load %arg1[%c28] : memref<32xf32, #tpu.memory_space<smem>>
    %426 = vector.broadcast %425 : f32 to vector<1x128xf32>
    %427 = arith.mulf %426, %0 : vector<1x128xf32>
    %c28_89 = arith.constant 28 : index
    %428 = memref.load %arg2[%c28_89] : memref<32xf32, #tpu.memory_space<smem>>
    %429 = vector.broadcast %428 : f32 to vector<1x128xf32>
    %430 = arith.addf %427, %429 : vector<1x128xf32>
    %c28_90 = arith.constant 28 : index
    %431 = memref.load %arg3[%c28_90] : memref<32xf32, #tpu.memory_space<smem>>
    %432 = arith.negf %430 : vector<1x128xf32>
    %433 = math.exp %432 : vector<1x128xf32>
    %cst_91 = arith.constant 1.000000e+00 : f32
    %434 = vector.broadcast %cst_91 : f32 to vector<1x128xf32>
    %435 = arith.addf %434, %433 : vector<1x128xf32>
    %436 = arith.divf %434, %435 : vector<1x128xf32>
    %437 = vector.broadcast %431 : f32 to vector<1x128xf32>
    %438 = arith.mulf %437, %436 : vector<1x128xf32>
    %439 = arith.addf %379, %438 : vector<1x128xf32>
    %c29 = arith.constant 29 : index
    %440 = memref.load %arg1[%c29] : memref<32xf32, #tpu.memory_space<smem>>
    %441 = vector.broadcast %440 : f32 to vector<1x128xf32>
    %442 = arith.mulf %441, %0 : vector<1x128xf32>
    %c29_92 = arith.constant 29 : index
    %443 = memref.load %arg2[%c29_92] : memref<32xf32, #tpu.memory_space<smem>>
    %444 = vector.broadcast %443 : f32 to vector<1x128xf32>
    %445 = arith.addf %442, %444 : vector<1x128xf32>
    %c29_93 = arith.constant 29 : index
    %446 = memref.load %arg3[%c29_93] : memref<32xf32, #tpu.memory_space<smem>>
    %447 = arith.negf %445 : vector<1x128xf32>
    %448 = math.exp %447 : vector<1x128xf32>
    %cst_94 = arith.constant 1.000000e+00 : f32
    %449 = vector.broadcast %cst_94 : f32 to vector<1x128xf32>
    %450 = arith.addf %449, %448 : vector<1x128xf32>
    %451 = arith.divf %449, %450 : vector<1x128xf32>
    %452 = vector.broadcast %446 : f32 to vector<1x128xf32>
    %453 = arith.mulf %452, %451 : vector<1x128xf32>
    %454 = arith.addf %394, %453 : vector<1x128xf32>
    %c30 = arith.constant 30 : index
    %455 = memref.load %arg1[%c30] : memref<32xf32, #tpu.memory_space<smem>>
    %456 = vector.broadcast %455 : f32 to vector<1x128xf32>
    %457 = arith.mulf %456, %0 : vector<1x128xf32>
    %c30_95 = arith.constant 30 : index
    %458 = memref.load %arg2[%c30_95] : memref<32xf32, #tpu.memory_space<smem>>
    %459 = vector.broadcast %458 : f32 to vector<1x128xf32>
    %460 = arith.addf %457, %459 : vector<1x128xf32>
    %c30_96 = arith.constant 30 : index
    %461 = memref.load %arg3[%c30_96] : memref<32xf32, #tpu.memory_space<smem>>
    %462 = arith.negf %460 : vector<1x128xf32>
    %463 = math.exp %462 : vector<1x128xf32>
    %cst_97 = arith.constant 1.000000e+00 : f32
    %464 = vector.broadcast %cst_97 : f32 to vector<1x128xf32>
    %465 = arith.addf %464, %463 : vector<1x128xf32>
    %466 = arith.divf %464, %465 : vector<1x128xf32>
    %467 = vector.broadcast %461 : f32 to vector<1x128xf32>
    %468 = arith.mulf %467, %466 : vector<1x128xf32>
    %469 = arith.addf %409, %468 : vector<1x128xf32>
    %c31 = arith.constant 31 : index
    %470 = memref.load %arg1[%c31] : memref<32xf32, #tpu.memory_space<smem>>
    %471 = vector.broadcast %470 : f32 to vector<1x128xf32>
    %472 = arith.mulf %471, %0 : vector<1x128xf32>
    %c31_98 = arith.constant 31 : index
    %473 = memref.load %arg2[%c31_98] : memref<32xf32, #tpu.memory_space<smem>>
    %474 = vector.broadcast %473 : f32 to vector<1x128xf32>
    %475 = arith.addf %472, %474 : vector<1x128xf32>
    %c31_99 = arith.constant 31 : index
    %476 = memref.load %arg3[%c31_99] : memref<32xf32, #tpu.memory_space<smem>>
    %477 = arith.negf %475 : vector<1x128xf32>
    %478 = math.exp %477 : vector<1x128xf32>
    %cst_100 = arith.constant 1.000000e+00 : f32
    %479 = vector.broadcast %cst_100 : f32 to vector<1x128xf32>
    %480 = arith.addf %479, %478 : vector<1x128xf32>
    %481 = arith.divf %479, %480 : vector<1x128xf32>
    %482 = vector.broadcast %476 : f32 to vector<1x128xf32>
    %483 = arith.mulf %482, %481 : vector<1x128xf32>
    %484 = arith.addf %424, %483 : vector<1x128xf32>
    %485 = arith.addf %439, %454 : vector<1x128xf32>
    %486 = arith.addf %485, %469 : vector<1x128xf32>
    %487 = arith.addf %486, %484 : vector<1x128xf32>
    %c0_101 = arith.constant 0 : index
    %488 = memref.load %arg4[%c0_101] : memref<1xf32, #tpu.memory_space<smem>>
    %489 = vector.broadcast %488 : f32 to vector<1x128xf32>
    %490 = arith.addf %487, %489 : vector<1x128xf32>
    %c0_102 = arith.constant 0 : index
    %c0_103 = arith.constant 0 : index
    %491 = vector.load %arg6[%c0_102, %c0_103] : memref<1x128xf32, #tpu.memory_space<vmem>>, vector<1x128xf32>
    tpu.vector_store %arg6[%c0_102, %c0_103], %490 {strides = array<i32>} : memref<1x128xf32, #tpu.memory_space<vmem>>, vector<1x128xf32>,
    return
  }
  func.func @transform_0(%arg0: i32) -> i32 {
    %c0_i32 = arith.constant 0 : i32
    %c0_i32_0 = arith.constant 0 : i32
    return %c0_i32 : i32
  }
  func.func @transform_1(%arg0: i32) -> i32 {
    %c0_i32 = arith.constant 0 : i32
    %c0_i32_0 = arith.constant 0 : i32
    return %c0_i32 : i32
  }
  func.func @transform_2(%arg0: i32) -> i32 {
    %c0_i32 = arith.constant 0 : i32
    %c0_i32_0 = arith.constant 0 : i32
    return %c0_i32 : i32
  }
  func.func @transform_3(%arg0: i32) -> i32 {
    %c0_i32 = arith.constant 0 : i32
    %c0_i32_0 = arith.constant 0 : i32
    return %c0_i32 : i32
  }
  func.func @transform_4(%arg0: i32) -> (i32, i32) {
    %c0_i32 = arith.constant 0 : i32
    %c0_i32_0 = arith.constant 0 : i32
    return %arg0, %c0_i32 : i32, i32
  }
  func.func @transform_5(%arg0: i32) -> (i32, i32) {
    %c0_i32 = arith.constant 0 : i32
    %c0_i32_0 = arith.constant 0 : i32
    return %arg0, %c0_i32 : i32, i32
  }
}

</mosaic_0001>

<bundles_post_ra>
// kernel: tpu_custom_call.1
= control target key start
LH: loop header
LB: loop body
LE: loop exit
PB: predicated region body
PF: predicated region fallthrough
CT: control target
= control target key end

     0   :  { %11 = vsyncpa [#allocation5], 0  ;;  %s1352_s0 = inlined_call_operand.vmem [shape: f32[32], index: 0, kind: input, shape index: {}]   ;;  %s1353_s1 = inlined_call_operand.vmem [shape: f32[32], index: 1, kind: input, shape index: {}]   ;;  %s1354_s2 = inlined_call_operand.vmem [shape: f32[32], index: 2, kind: input, shape index: {}]   ;;  %s1355_s3 = inlined_call_operand.<no memory space> [shape: f32[1], index: 3, kind: input, shape index: {}]   ;;  %s1356_s4 = inlined_call_operand.vmem [shape: f32[1,128], index: 4, kind: input, shape index: {}]   ;;  %s1357_s5 = inlined_call_operand.hbm [shape: f32[1,128], index: 5, kind: output, shape index: {}]  }
   0x1   :  { %12 = vsyncpa [#allocation7], 0  ;;  %s30_s20 = sshll.u32 %s1353_s1, 4  ;;  %s31_s20 = int_to_ptr.vmem [resolvable:$true] %s30_s20 }
   0x2   :  { %13 = vsyncpa [#allocation4], 0  ;;  %s20_s23 = sshll.u32 %s1352_s0, 4  ;;  %s851_s24 = scalar_lea.vmem %s31_s20, 16  ;;  %s21_s23 = int_to_ptr.vmem [resolvable:$true] %s20_s23 }
   0x3   :  { %p852_p0 = scmp.ne.s32.totalorder %s31_s20, %s851_s24  ;;  %p856_p1 = scmp.lt.s32.totalorder %s31_s20, %s31_s20 }
   0x4   :  { %p857_p2 = scmp.lt.s32.totalorder %s851_s24, %s851_s24 }
   0x6   :  { %p858_p3 = por %p857_p2, %p856_p1 }
   0x8   :  { %p859_p4 = pnand %p858_p3, %p852_p0 }
   0xa   :  { %862 = shalt.err (!%p859_p4)
}
   0xb   :  { %s915_s25 = smov [#allocation6]   ;;  %s863_s26 = scalar_lea.vmem %s21_s23, 16 }
   0xc   :  { %33 = dma.vmem_to_smem %s31_s20, 16, %s915_s25, [#allocation7]  }
   0xd   :  { %p864_p5 = scmp.ne.s32.totalorder %s21_s23, %s863_s26  ;;  %p868_p6 = scmp.lt.s32.totalorder %s21_s23, %s21_s23 }
   0xe   :  { %p869_p7 = scmp.lt.s32.totalorder %s863_s26, %s863_s26 }
  0x10   :  { %p870_p8 = por %p869_p7, %p868_p6 }
  0x12   :  { %p871_p9 = pnand %p870_p8, %p864_p5 }
  0x14   :  { %874 = shalt.err (!%p871_p9)
}
  0x15   :  { %s916_s1 = smov [#allocation3]   ;;  %s40_s28 = sshll.u32 %s1354_s2, 4  ;;  %s41_s28 = int_to_ptr.vmem [resolvable:$true] %s40_s28 }
  0x16   :  { %23 = dma.vmem_to_smem %s21_s23, 16, %s916_s1, [#allocation5]  }
  0x17   :  { %s875_s29 = scalar_lea.vmem %s41_s28, 16  ;;  %p880_p11 = scmp.lt.s32.totalorder %s41_s28, %s41_s28 }
  0x18   :  { %p876_p10 = scmp.ne.s32.totalorder %s41_s28, %s875_s29  ;;  %p881_p12 = scmp.lt.s32.totalorder %s875_s29, %s875_s29 }
  0x1a   :  { %p882_p13 = por %p881_p12, %p880_p11 }
  0x1c   :  { %p883_p0 = pnand %p882_p13, %p876_p10 }
  0x1e   :  { %886 = shalt.err (!%p883_p0)
}
  0x1f   :  { %s917_s30 = smov [#allocation8]  }
  0x20   :  { %43 = dma.vmem_to_smem %s41_s28, 16, %s917_s30, [#allocation7]  }
  0x21   :  { %909 = dma.done.wait [#allocation5], 16  }
  0x22   :  { %910 = vsyncadd [#allocation5], 4294967280 }
  0x23   :  { %911 = dma.done.wait [#allocation7], 32  }
  0x24   :  { %912 = vsyncadd [#allocation7], 4294967264 }
  0x25   :  { %57 = sfence }
  0x26   :  { %s59_s6 = sld [smem:[#allocation3]]  ;;  %s595_s8 = sld [smem:[#allocation3 + $0x1]]  ;;  %v961_v0 = vld [vmem:[%s1356_s4] sm:$0x1] }
  0x27   :  { %s62_s7 = sld [smem:[#allocation6]]  ;;  %s599_s9 = sld [smem:[#allocation3 + $0x2]] }
  0x28   :  { %s596_s2 = sld [smem:[#allocation6 + $0x1]]  ;;  %s603_s10 = sld [smem:[#allocation3 + $0x3]] }
  0x29   :  { %s600_s13 = sld [smem:[#allocation6 + $0x2]]  ;;  %s604_s14 = sld [smem:[#allocation6 + $0x3]] }
  0x2a   :  { %s607_s15 = sld [smem:[#allocation3 + $0x4]]  ;;  %s964_s16 = sld [smem:[#allocation3 + $0x5]] }
  0x2b   :  { %s966_s17 = sld [smem:[#allocation3 + $0x6]]  ;;  %s969_s18 = sld [smem:[#allocation3 + $0x7]] }
  0x2c   :  { %v60_v1 = vstv %s59_s6  ;;  %v76_v3 = vstv %s595_s8  ;;  %s971_s4 = sld [smem:[#allocation6 + $0x4]]  ;;  %s974_s19 = sld [smem:[#allocation6 + $0x5]] }
  0x2d   :  { %v61_v2 = vmul.f32 %v60_v1, %v961_v0  ;;  %v63_v4 = vstv %s62_s7  ;;  %v92_v5 = vstv %s599_s9  ;;  %v77_v6 = vmul.f32 %v76_v3, %v961_v0  ;;  %s976_s20 = sld [smem:[#allocation3 + $0x8]]  ;;  %s978_s21 = sld [smem:[#allocation6 + $0x6]] }
  0x2e   :  { %v79_v8 = vstv %s596_s2  ;;  %v108_v9 = vstv %s603_s10  ;;  %v93_v10 = vmul.f32 %v92_v5, %v961_v0  ;;  %s981_s22 = sld [smem:[#allocation6 + $0x7]]  ;;  %s983_s23 = sld [smem:[#allocation3 + $0x9]] }
  0x2f   :  { %v64_v7 = vadd.f32 %v63_v4, %v61_v2  ;;  %v95_v11 = vstv %s600_s13  ;;  %v80_v12 = vadd.f32 %v79_v8, %v77_v6  ;;  %v109_v13 = vmul.f32 %v108_v9, %v961_v0  ;;  %s986_s24 = sld [smem:[#allocation6 + $0x8]]  ;;  %s989_s25 = sld [smem:[#allocation3 + $0xa]] }
  0x30   :  { %v111_v15 = vstv %s604_s14  ;;  %v124_v16 = vstv %s607_s15  ;;  %v96_v17 = vadd.f32 %v95_v11, %v93_v10  ;;  %v140_v18 = vstv %s964_s16  ;;  %s995_s26 = sld [smem:[#allocation6 + $0x9]]  ;;  %s997_s1 = sld [smem:[#allocation3 + $0xb]] }
  0x31   :  { %v594_v14 = vmul.f32 -1.442695, %v64_v7  ;;  %v156_v19 = vstv %s966_s17  ;;  %v598_v20 = vmul.f32 -1.442695, %v80_v12  ;;  %v112_v21 = vadd.f32 %v111_v15, %v109_v13  ;;  %s1004_s0 = sld [smem:[#allocation6 + $0xa]]  ;;  %s1006_s27 = sld [smem:[#allocation3 + $0xc]] }
  0x32   :  { %v125_v22 = vmul.f32 %v124_v16, %v961_v0  ;;  %v172_v23 = vstv %s969_s18  ;;  %v127_v24 = vstv %s971_s4  ;;  %v141_v25 = vmul.f32 %v140_v18, %v961_v0  ;;  %s1011_s28 = sld [smem:[#allocation6 + $0xb]]  ;;  %s1013_s29 = sld [smem:[#allocation3 + $0xd]] }
  0x33   :  { %723 = vpow2.f32 %v594_v14  ;;  %v602_v26 = vmul.f32 -1.442695, %v96_v17  ;;  %v143_v27 = vstv %s974_s19  ;;  %v157_v28 = vmul.f32 %v156_v19, %v961_v0  ;;  %s1017_s30 = sld [smem:[#allocation6 + $0xc]]  ;;  %s1022_s6 = sld [smem:[#allocation6 + $0xd]] }
  0x34   :  { %v188_v29 = vstv %s976_s20  ;;  %v159_v30 = vstv %s978_s21  ;;  %v173_v31 = vmul.f32 %v172_v23, %v961_v0  ;;  %725 = vpow2.f32 %v598_v20  ;;  %s1025_s7 = sld [smem:[#allocation3 + $0xe]]  ;;  %s1030_s8 = sld [smem:[#allocation3 + $0xf]] }
  0x35   :  { %v606_v32 = vmul.f32 -1.442695, %v112_v21  ;;  %v128_v33 = vadd.f32 %v127_v24, %v125_v22  ;;  %v175_v34 = vstv %s981_s22  ;;  %v144_v35 = vadd.f32 %v143_v27, %v141_v25  ;;  %s1035_s9 = sld [smem:[#allocation6 + $0xe]]  ;;  %s1038_s2 = sld [smem:[#allocation3 + $0x10]] }
  0x36   :  { %v189_v36 = vmul.f32 %v188_v29, %v961_v0  ;;  %v204_v37 = vstv %s983_s23  ;;  %727 = vpow2.f32 %v602_v26  ;;  %v160_v38 = vadd.f32 %v159_v30, %v157_v28  ;;  %s1041_s10 = sld [smem:[#allocation6 + $0xf]]  ;;  %s1045_s11 = sld [smem:[#allocation6 + $0x10]] }
  0x37   :  { %v191_v39 = vstv %s986_s24  ;;  %v176_v40 = vadd.f32 %v175_v34, %v173_v31  ;;  %v220_v41 = vstv %s989_s25  ;;  %729 = vpow2.f32 %v606_v32  ;;  %s1047_s12 = sld [smem:[#allocation3 + $0x11]]  ;;  %s1049_s13 = sld [smem:[#allocation8]] }
  0x38   :  { %v610_v42 = vmul.f32 -1.442695, %v128_v33  ;;  %v205_v43 = vmul.f32 %v204_v37, %v961_v0  ;;  %v614_v44 = vmul.f32 -1.442695, %v144_v35  ;;  %v192_v45 = vadd.f32 %v191_v39, %v189_v36  ;;  %s1051_s14 = sld [smem:[#allocation8 + $0x1]]  ;;  %s1054_s15 = sld [smem:[#allocation8 + $0x2]] }
  0x39   :  { %v207_v46 = vstv %s995_s26  ;;  %v236_v47 = vstv %s997_s1  ;;  %v618_v48 = vmul.f32 -1.442695, %v160_v38  ;;  %v221_v49 = vmul.f32 %v220_v41, %v961_v0  ;;  %s1057_s16 = sld [smem:[#allocation3 + $0x12]]  ;;  %s1060_s17 = sld [smem:[#allocation8 + $0x3]] }
  0x3a   :  { %v622_v51 = vmul.f32 -1.442695, %v176_v40  ;;  %v223_v52 = vstv %s1004_s0  ;;  %v252_v53 = vstv %s1006_s27  ;;  %731 = vpow2.f32 %v610_v42  ;;  %s1064_s18 = sld [smem:[#allocation6 + $0x11]]  ;;  %s1066_s4 = sld [smem:[#allocation8 + $0x4]] }
  0x3b   :  { %v208_v54 = vadd.f32 %v207_v46, %v205_v43  ;;  %v237_v55 = vmul.f32 %v236_v47, %v961_v0  ;;  %733 = vpow2.f32 %v614_v44  ;;  %v626_v56 = vmul.f32 -1.442695, %v192_v45  ;;  %s1069_s19 = sld [smem:[#allocation3 + $0x14]]  ;;  %s1071_s20 = sld [smem:[#allocation8 + $0x5]] }
  0x3c   :  { %v239_v57 = vstv %s1011_s28  ;;  %v268_v58 = vstv %s1013_s29  ;;  %735 = vpow2.f32 %v618_v48  ;;  %v224_v60 = vadd.f32 %v223_v52, %v221_v49  ;;  %s1073_s21 = sld [smem:[#allocation6 + $0x12]]  ;;  %s1078_s22 = sld [smem:[#allocation6 + $0x14]] }
  0x3d   :  { %v724_v50 = vpop.eup %723  ;;  %v253_v61 = vmul.f32 %v252_v53, %v961_v0  ;;  %737 = vpow2.f32 %v622_v51  ;;  %v255_v63 = vstv %s1017_s30  ;;  %v630_v2 = vmul.f32 -1.442695, %v208_v54  ;;  %s1080_s23 = sld [smem:[#allocation3 + $0x15]]  ;;  %s1084_s24 = sld [smem:[#allocation3 + $0x13]] }
  0x3e   :  { %v726_v59 = vpop.eup %725  ;;  %v69_v62 = vadd.f32 1.0, %v724_v50  ;;  %v240_v3 = vadd.f32 %v239_v57, %v237_v55  ;;  %v269_v4 = vmul.f32 %v268_v58, %v961_v0  ;;  %739 = vpow2.f32 %v626_v56  ;;  %s1086_s25 = sld [smem:[#allocation6 + $0x15]]  ;;  %s1091_s26 = sld [smem:[#allocation8 + $0x6]] }
  0x3f   :  { %v85_v5 = vadd.f32 1.0, %v726_v59  ;;  %v271_v6 = vstv %s1022_s6  ;;  %v634_v8 = vmul.f32 -1.442695, %v224_v60  ;;  %v256_v9 = vadd.f32 %v255_v63, %v253_v61  ;;  %s1094_s1 = sld [smem:[#allocation3 + $0x16]]  ;;  %s1105_s27 = sld [smem:[#allocation6 + $0x13]] }
  0x40   :  { %v728_v1 = vpop.eup %727  ;;  %v284_v10 = vstv %s1025_s7  ;;  %741 = vrcp.f32 %v69_v62  ;;  %v638_v12 = vmul.f32 -1.442695, %v240_v3  ;;  %v272_v13 = vadd.f32 %v271_v6, %v269_v4  ;;  %s1101_s0 = sld [smem:[#allocation6 + $0x16]]  ;;  %s1108_s28 = sld [smem:[#allocation3 + $0x17]] }
  0x41   :  { %v730_v7 = vpop.eup %729  ;;  %v101_v11 = vadd.f32 1.0, %v728_v1  ;;  %743 = vpow2.f32 %v630_v2  ;;  %v300_v14 = vstv %s1030_s8  ;;  %v285_v16 = vmul.f32 %v284_v10, %v961_v0  ;;  %s1113_s29 = sld [smem:[#allocation8 + $0x7]]  ;;  %s1116_s30 = sld [smem:[#allocation8 + $0x8]] }
  0x42   :  { %745 = vrcp.f32 %v85_v5  ;;  %v117_v15 = vadd.f32 1.0, %v730_v7  ;;  %v642_v18 = vmul.f32 -1.442695, %v256_v9  ;;  %v287_v19 = vstv %s1035_s9  ;;  %s1118_s6 = sld [smem:[#allocation8 + $0x9]]  ;;  %s1125_s7 = sld [smem:[#allocation6 + $0x17]] }
  0x43   :  { %747 = vpow2.f32 %v634_v8  ;;  %v301_v21 = vmul.f32 %v300_v14, %v961_v0  ;;  %v316_v22 = vstv %s1038_s2  ;;  %v646_v24 = vmul.f32 -1.442695, %v272_v13  ;;  %s1130_s8 = sld [smem:[#allocation3 + $0x18]]  ;;  %s1135_s2 = sld [smem:[#allocation8 + $0xa]] }
  0x44   :  { %v732_v17 = vpop.eup %731  ;;  %749 = vrcp.f32 %v101_v11  ;;  %v303_v25 = vstv %s1041_s10  ;;  %v288_v28 = vadd.f32 %v287_v19, %v285_v16  ;;  %v317_v30 = vmul.f32 %v316_v22, %v961_v0  ;;  %s1132_s9 = sld [smem:[#allocation6 + $0x18]]  ;;  %s1138_s10 = sld [smem:[#allocation8 + $0xb]] }
  0x45   :  { %v734_v20 = vpop.eup %733  ;;  %751 = vpow2.f32 %v638_v12  ;;  %v133_v27 = vadd.f32 1.0, %v732_v17  ;;  %v304_v33 = vadd.f32 %v303_v25, %v301_v21  ;;  %v319_v34 = vstv %s1045_s11  ;;  %s1140_s11 = sld [smem:[#allocation8 + $0xc]] }
  0x46   :  { %v736_v23 = vpop.eup %735  ;;  %753 = vrcp.f32 %v117_v15  ;;  %v149_v29 = vadd.f32 1.0, %v734_v20  ;;  %v332_v35 = vstv %s1047_s12  ;;  %v72_v36 = vstv %s1049_s13  ;;  %s1145_s12 = sld [smem:[#allocation8 + $0xd]]  ;;  %s1224_s13 = sld [smem:[#allocation3 + $0x1f]] }
  0x47   :  { %v738_v26 = vpop.eup %737  ;;  %755 = vpow2.f32 %v642_v18  ;;  %v165_v32 = vadd.f32 1.0, %v736_v23  ;;  %v88_v37 = vstv %s1051_s14  ;;  %v104_v40 = vstv %s1054_s15  ;;  %s1230_s14 = sld [smem:[#allocation6 + $0x1f]]  ;;  %s1251_s15 = sld [smem:[#allocation8 + $0x10]] }
  0x48   :  { %v740_v31 = vpop.eup %739  ;;  %v181_v38 = vadd.f32 1.0, %v738_v26  ;;  %757 = vpow2.f32 %v646_v24  ;;  %v650_v41 = vmul.f32 -1.442695, %v288_v28  ;;  %v348_v42 = vstv %s1057_s16  ;;  %s1153_s16 = sld [smem:[#allocation3 + $0x19]] }
  0x49   :  { %759 = vrcp.f32 %v133_v27  ;;  %v197_v44 = vadd.f32 1.0, %v740_v31  ;;  %v320_v45 = vadd.f32 %v319_v34, %v317_v30  ;;  %v333_v46 = vmul.f32 %v332_v35, %v961_v0 }
  0x4a   :  { %v1088_v39 = vpop.eup %741  ;;  %761 = vrcp.f32 %v149_v29  ;;  %v120_v48 = vstv %s1060_s17  ;;  %v654_v49 = vmul.f32 -1.442695, %v304_v33  ;;  %v335_v50 = vstv %s1064_s18  ;;  %s1155_s18 = sld [smem:[#allocation6 + $0x19]] }
  0x4b   :  { %v744_v43 = vpop.eup %743  ;;  %763 = vrcp.f32 %v165_v32  ;;  %v136_v52 = vstv %s1066_s4  ;;  %v349_v53 = vmul.f32 %v348_v42, %v961_v0  ;;  %v380_v54 = vstv %s1069_s19  ;;  %s1160_s19 = sld [smem:[#allocation3 + $0x1a]]  ;;  %s1257_s17 = sld [smem:[#allocation8 + $0x11]] }
  0x4c   :  { %v1097_v47 = vpop.eup %745  ;;  %765 = vrcp.f32 %v181_v38  ;;  %v152_v56 = vstv %s1071_s20  ;;  %v213_v57 = vadd.f32 1.0, %v744_v43  ;;  %v351_v58 = vstv %s1073_s21  ;;  %s1166_s21 = sld [smem:[#allocation8 + $0xe]]  ;;  %s1261_s4 = sld [smem:[#allocation8 + $0x12]] }
  0x4d   :  { %v748_v51 = vpop.eup %747  ;;  %767 = vpow2.f32 %v650_v41  ;;  %v658_v60 = vmul.f32 -1.442695, %v320_v45  ;;  %v336_v61 = vadd.f32 %v335_v50, %v333_v46  ;;  %v381_v62 = vmul.f32 %v380_v54, %v961_v0  ;;  %s1275_s20 = sld [smem:[#allocation8 + $0x14]] }
  0x4e   :  { %v1110_v55 = vpop.eup %749  ;;  %769 = vrcp.f32 %v197_v44  ;;  %v229_v1 = vadd.f32 1.0, %v748_v51  ;;  %v383_v2 = vstv %s1078_s22  ;;  %v396_v3 = vstv %s1080_s23  ;;  %s1168_s22 = sld [smem:[#allocation6 + $0x1a]]  ;;  %s1171_s23 = sld [smem:[#allocation3 + $0x1b]] }
  0x4f   :  { %v752_v59 = vpop.eup %751  ;;  %771 = vpow2.f32 %v654_v49  ;;  %v352_v5 = vadd.f32 %v351_v58, %v349_v53  ;;  %v364_v6 = vstv %s1084_s24  ;;  %v397_v7 = vmul.f32 %v396_v3, %v961_v0  ;;  %s1178_s24 = sld [smem:[#allocation6 + $0x1b]] }
  0x50   :  { %v1121_v63 = vpop.eup %753  ;;  %v399_v8 = vstv %s1086_s25  ;;  %v168_v9 = vstv %s1091_s26  ;;  %773 = vrcp.f32 %v213_v57  ;;  %v245_v10 = vadd.f32 1.0, %v752_v59  ;;  %s1184_s25 = sld [smem:[#allocation3 + $0x1c]]  ;;  %s1283_s26 = sld [smem:[#allocation8 + $0xf]] }
  0x51   :  { %v756_v4 = vpop.eup %755  ;;  %v412_v11 = vstv %s1094_s1  ;;  %775 = vpow2.f32 %v658_v60  ;;  %v662_v13 = vmul.f32 -1.442695, %v336_v61  ;;  %v384_v14 = vadd.f32 %v383_v2, %v381_v62  ;;  %s1189_s1 = sld [smem:[#allocation6 + $0x1c]] }
  0x52   :  { %v758_v12 = vpop.eup %757  ;;  %v413_v15 = vmul.f32 %v412_v11, %v961_v0  ;;  %v261_v17 = vadd.f32 1.0, %v756_v4  ;;  %v365_v18 = vmul.f32 %v364_v6, %v961_v0  ;;  %v400_v19 = vadd.f32 %v399_v8, %v397_v7 }
  0x53   :  { %v1143_v16 = vpop.eup %759  ;;  %v415_v20 = vstv %s1101_s0  ;;  %777 = vrcp.f32 %v229_v1  ;;  %v666_v22 = vmul.f32 -1.442695, %v352_v5  ;;  %v367_v23 = vstv %s1105_s27  ;;  %s1195_s0 = sld [smem:[#allocation3 + $0x1d]] }
  0x54   :  { %v1149_v21 = vpop.eup %761  ;;  %v428_v24 = vstv %s1108_s28  ;;  %v184_v26 = vstv %s1113_s29  ;;  %779 = vrcp.f32 %v245_v10  ;;  %v277_v27 = vadd.f32 1.0, %v758_v12  ;;  %s1205_s27 = sld [smem:[#allocation6 + $0x1d]]  ;;  %s1209_s28 = sld [smem:[#allocation3 + $0x1e]] }
  0x55   :  { %v1157_v25 = vpop.eup %763  ;;  %v416_v28 = vadd.f32 %v415_v20, %v413_v15  ;;  %v200_v30 = vstv %s1116_s30  ;;  %v216_v31 = vstv %s1118_s6  ;;  %781 = vpow2.f32 %v662_v13  ;;  %s1285_s30 = sld [smem:[#allocation8 + $0x15]]  ;;  %s1288_s29 = sld [smem:[#allocation8 + $0x16]] }
  0x56   :  { %v1162_v29 = vpop.eup %765  ;;  %v674_v32 = vmul.f32 -1.442695, %v384_v14  ;;  %783 = vrcp.f32 %v261_v17  ;;  %v368_v34 = vadd.f32 %v367_v23, %v365_v18  ;;  %v678_v35 = vmul.f32 -1.442695, %v400_v19  ;;  %s1296_s6 = sld [smem:[#allocation8 + $0x18]] }
  0x57   :  { %v768_v33 = vpop.eup %767  ;;  %v429_v38 = vmul.f32 %v428_v24, %v961_v0  ;;  %785 = vpow2.f32 %v666_v22  ;;  %v431_v42 = vstv %s1125_s7  ;;  %v444_v43 = vstv %s1130_s8  ;;  %s1221_s7 = sld [smem:[#allocation6 + $0x1e]]  ;;  %s1301_s8 = sld [smem:[#allocation8 + $0x13]] }
  0x58   :  { %v1173_v41 = vpop.eup %769  ;;  %v447_v44 = vstv %s1132_s9  ;;  %v232_v46 = vstv %s1135_s2  ;;  %787 = vrcp.f32 %v277_v27  ;;  %v682_v49 = vmul.f32 -1.442695, %v416_v28  ;;  %s1309_s9 = sld [smem:[#allocation8 + $0x19]]  ;;  %s1312_s2 = sld [smem:[#allocation8 + $0x1a]] }
  0x59   :  { %v772_v45 = vpop.eup %771  ;;  %v445_v50 = vmul.f32 %v444_v43, %v961_v0  ;;  %v248_v51 = vstv %s1138_s10  ;;  %v264_v53 = vstv %s1140_s11  ;;  %v293_v54 = vadd.f32 1.0, %v768_v33  ;;  %s1314_s10 = sld [smem:[#allocation8 + $0x1c]]  ;;  %s1318_s11 = sld [smem:[#allocation8 + $0x17]] }
  0x5a   :  { %789 = vpow2.f32 %v674_v32  ;;  %v1186_v57 = vpop.eup %773  ;;  %v280_v58 = vstv %s1145_s12  ;;  %v432_v59 = vadd.f32 %v431_v42, %v429_v38  ;;  %v309_v62 = vadd.f32 1.0, %v772_v45  ;;  %s1323_s12 = sld [smem:[#allocation8 + $0x1d]] }
  0x5b   :  { %791 = vpow2.f32 %v678_v35  ;;  %v448_v60 = vadd.f32 %v447_v44, %v445_v50  ;;  %v776_v61 = vpop.eup %775  ;;  %v670_v1 = vmul.f32 -1.442695, %v368_v34  ;;  %v460_v2 = vstv %s1153_s16  ;;  %s1326_s16 = sld [smem:[#allocation8 + $0x1b]] }
  0x5c   :  { %v463_v3 = vstv %s1155_s18  ;;  %793 = vpow2.f32 %v682_v49  ;;  %v461_v5 = vmul.f32 %v460_v2, %v961_v0  ;;  %v476_v6 = vstv %s1160_s19  ;;  %s1329_s18 = sld [smem:[#allocation8 + $0x1e]]  ;;  %s717_s19 = sld [smem:[#allocation8 + $0x1f]] }
  0x5d   :  { %v690_v4 = vmul.f32 -1.442695, %v448_v60  ;;  %v1197_v7 = vpop.eup %777  ;;  %795 = vrcp.f32 %v293_v54  ;;  %v296_v8 = vstv %s1166_s21  ;;  %v477_v10 = vmul.f32 %v476_v6, %v961_v0 }
  0x5e   :  { %v479_v11 = vstv %s1168_s22  ;;  %v1202_v12 = vpop.eup %779  ;;  %v686_v13 = vmul.f32 -1.442695, %v432_v59  ;;  %v464_v14 = vadd.f32 %v463_v3, %v461_v5  ;;  %v492_v15 = vstv %s1171_s23  ;;  %s918_s23 = smov [#allocation9]  }
  0x5f   :  { %797 = vpow2.f32 %v690_v4  ;;  %v782_v17 = vpop.eup %781  ;;  %v480_v18 = vadd.f32 %v479_v11, %v477_v10  ;;  %v493_v19 = vmul.f32 %v492_v15, %v961_v0  ;;  %v495_v20 = vstv %s1178_s24  ;;  %s584_s24 = sshll.u32 %s918_s23, 4  ;;  %s585_s24 = int_to_ptr.vmem [resolvable:$true] %s584_s24 }
  0x60   :  { %799 = vpow2.f32 %v670_v1  ;;  %v1211_v22 = vpop.eup %783  ;;  %v73_v23 = vmul.f32 %v1088_v39, %v72_v36  ;;  %v1219_v24 = vmul.f32 %v1097_v47, %v88_v37  ;;  %v694_v27 = vmul.f32 -1.442695, %v464_v14  ;;  %p892_p2 = scmp.lt.s32.totalorder %s585_s24, %s585_s24 }
  0x61   :  { %801 = vrcp.f32 %v309_v62  ;;  %v786_v28 = vpop.eup %785  ;;  %v325_v32 = vadd.f32 1.0, %v776_v61  ;;  %v698_v33 = vmul.f32 -1.442695, %v480_v18  ;;  %v496_v34 = vadd.f32 %v495_v20, %v493_v19 }
  0x62   :  { %v508_v35 = vstv %s1184_s25  ;;  %v1226_v36 = vpop.eup %787  ;;  %v341_v37 = vadd.f32 1.0, %v782_v17  ;;  %803 = vpow2.f32 %v686_v13  ;;  %v511_v47 = vstv %s1189_s1  ;;  %s887_s25 = scalar_lea.vmem %s585_s24, 16  ;;  %s891_s1 = scalar_lea.vmem %s585_s24, 32 }
  0x63   :  { %v509_v39 = vmul.f32 %v508_v35, %v961_v0  ;;  %v105_v42 = vmul.f32 %v1110_v55, %v104_v40  ;;  %v1238_v43 = vmul.f32 %v1121_v63, %v120_v48  ;;  %805 = vpow2.f32 %v694_v27  ;;  %p888_p1 = scmp.ne.s32.totalorder %s585_s24, %s887_s25  ;;  %p893_p3 = scmp.lt.s32.totalorder %s891_s1, %s887_s25 }
  0x64   :  { %v790_v38 = vpop.eup %789  ;;  %v702_v44 = vmul.f32 -1.442695, %v496_v34  ;;  %v137_v49 = vmul.f32 %v1143_v16, %v136_v52  ;;  %807 = vpow2.f32 %v698_v33  ;;  %v524_v54 = vstv %s1195_s0 }
  0x65   :  { %v792_v45 = vpop.eup %791  ;;  %v512_v50 = vadd.f32 %v511_v47, %v509_v39  ;;  %v153_v59 = vmul.f32 %v1149_v21, %v152_v56  ;;  %809 = vrcp.f32 %v325_v32  ;;  %v357_v40 = vadd.f32 1.0, %v786_v28  ;;  %p894_p4 = por %p893_p3, %p892_p2 }
  0x66   :  { %v525_v48 = vmul.f32 %v524_v54, %v961_v0  ;;  %v794_v55 = vpop.eup %793  ;;  %811 = vrcp.f32 %v341_v37  ;;  %v389_v63 = vadd.f32 1.0, %v790_v38  ;;  %v527_v61 = vstv %s1205_s27 }
  0x67   :  { %v706_v60 = vmul.f32 -1.442695, %v512_v50  ;;  %v1249_v62 = vpop.eup %795  ;;  %v405_v52 = vadd.f32 1.0, %v792_v45  ;;  %813 = vpow2.f32 %v702_v44  ;;  %v540_v56 = vstv %s1209_s28  ;;  %p895_p5 = pnand %p894_p4, %p888_p1 }
  0x68   :  { %v528_v16 = vadd.f32 %v527_v61, %v525_v48  ;;  %v169_v1 = vmul.f32 %v1157_v25, %v168_v9  ;;  %v541_v2 = vmul.f32 %v540_v56, %v961_v0  ;;  %v543_v3 = vstv %s1221_s7 }
  0x69   :  { %v798_v21 = vpop.eup %797  ;;  %815 = vpow2.f32 %v706_v60  ;;  %v421_v5 = vadd.f32 1.0, %v794_v55  ;;  %v556_v10 = vstv %s1224_s13  ;;  %v559_v25 = vstv %s1230_s14 }
  0x6a   :  { %v800_v4 = vpop.eup %799  ;;  %817 = vrcp.f32 %v357_v40  ;;  %v710_v6 = vmul.f32 -1.442695, %v528_v16  ;;  %v544_v13 = vadd.f32 %v543_v3, %v541_v2  ;;  %v557_v9 = vmul.f32 %v556_v10, %v961_v0 }
  0x6b   :  { %v1264_v11 = vpop.eup %801  ;;  %819 = vrcp.f32 %v389_v63  ;;  %v138_v14 = vadd.f32 %v137_v49, %v73_v23  ;;  %v201_v15 = vmul.f32 %v1173_v41, %v200_v30  ;;  %v453_v17 = vadd.f32 1.0, %v798_v21 }
  0x6c   :  { %821 = vrcp.f32 %v405_v52  ;;  %v804_v18 = vpop.eup %803  ;;  %v373_v19 = vadd.f32 1.0, %v800_v4  ;;  %v714_v20 = vmul.f32 -1.442695, %v544_v13  ;;  %v560_v27 = vadd.f32 %v559_v25, %v557_v9 }
  0x6d   :  { %823 = vpow2.f32 %v710_v6  ;;  %v806_v28 = vpop.eup %805  ;;  %v154_v32 = vadd.f32 %v153_v59, %v1219_v24  ;;  %v170_v33 = vadd.f32 %v169_v1, %v105_v42  ;;  %v185_v0 = vmul.f32 %v1162_v29, %v184_v26 }
  0x6e   :  { %825 = vrcp.f32 %v421_v5  ;;  %v808_v30 = vpop.eup %807  ;;  %v217_v41 = vmul.f32 %v1186_v57, %v216_v31  ;;  %v233_v23 = vmul.f32 %v1197_v7, %v232_v46  ;;  %v469_v24 = vadd.f32 1.0, %v806_v28 }
  0x6f   :  { %827 = vpow2.f32 %v714_v20  ;;  %v810_v26 = vpop.eup %809  ;;  %v328_v29 = vstv %s1251_s15  ;;  %v485_v34 = vadd.f32 1.0, %v808_v30  ;;  %v718_v35 = vmul.f32 -1.442695, %v560_v27 }
  0x70   :  { %829 = vrcp.f32 %v453_v17  ;;  %v812_v31 = vpop.eup %811  ;;  %v202_v57 = vadd.f32 %v201_v15, %v138_v14  ;;  %v265_v46 = vmul.f32 %v1211_v22, %v264_v53  ;;  %v437_v7 = vadd.f32 1.0, %v804_v18 }
  0x71   :  { %831 = vrcp.f32 %v373_v19  ;;  %v814_v37 = vpop.eup %813  ;;  %v186_v39 = vadd.f32 %v185_v0, %v1238_v43  ;;  %v344_v47 = vstv %s1257_s17  ;;  %v360_v38 = vstv %s1261_s4 }
  0x72   :  { %833 = vrcp.f32 %v469_v24  ;;  %v218_v44 = vadd.f32 %v217_v41, %v154_v32  ;;  %v234_v45 = vadd.f32 %v233_v23, %v170_v33  ;;  %v281_v49 = vmul.f32 %v1226_v36, %v280_v58 }
  0x73   :  { %v816_v42 = vpop.eup %815  ;;  %835 = vrcp.f32 %v485_v34  ;;  %v249_v22 = vmul.f32 %v1202_v12, %v248_v51  ;;  %v297_v43 = vmul.f32 %v1249_v62, %v296_v8  ;;  %v266_v59 = vadd.f32 %v265_v46, %v202_v57 }
  0x74   :  { %v818_v53 = vpop.eup %817  ;;  %v517_v50 = vadd.f32 1.0, %v816_v42  ;;  %837 = vpow2.f32 %v718_v35  ;;  %v329_v40 = vmul.f32 %v810_v26, %v328_v29  ;;  %v501_v58 = vadd.f32 1.0, %v814_v37 }
  0x75   :  { %v820_v54 = vpop.eup %819  ;;  %839 = vrcp.f32 %v437_v7  ;;  %v392_v48 = vstv %s1275_s20  ;;  %v282_v8 = vadd.f32 %v281_v49, %v218_v44  ;;  %v312_v12 = vstv %s1283_s26 }
  0x76   :  { %v822_v36 = vpop.eup %821  ;;  %841 = vrcp.f32 %v517_v50  ;;  %v345_v55 = vmul.f32 %v812_v31, %v344_v47  ;;  %v408_v63 = vstv %s1285_s30  ;;  %v298_v61 = vadd.f32 %v297_v43, %v234_v45 }
  0x77   :  { %v824_v51 = vpop.eup %823  ;;  %v361_v62 = vmul.f32 %v818_v53, %v360_v38  ;;  %v424_v52 = vstv %s1288_s29  ;;  %v250_v21 = vadd.f32 %v249_v22, %v186_v39  ;;  %v330_v1 = vadd.f32 %v329_v40, %v266_v59 }
  0x78   :  { %v826_v60 = vpop.eup %825  ;;  %v533_v16 = vadd.f32 1.0, %v824_v51  ;;  %v393_v2 = vmul.f32 %v820_v54, %v392_v48  ;;  %843 = vrcp.f32 %v501_v58  ;;  %v313_v4 = vmul.f32 %v1264_v11, %v312_v12 }
  0x79   :  { %v828_v56 = vpop.eup %827  ;;  %v456_v5 = vstv %s1296_s6  ;;  %v346_v13 = vadd.f32 %v345_v55, %v282_v8  ;;  %v376_v9 = vstv %s1301_s8  ;;  %v409_v25 = vmul.f32 %v822_v36, %v408_v63 }
  0x7a   :  { %v830_v3 = vpop.eup %829  ;;  %845 = vrcp.f32 %v533_v16  ;;  %v549_v6 = vadd.f32 1.0, %v828_v56  ;;  %v362_v15 = vadd.f32 %v361_v62, %v298_v61  ;;  %v425_v17 = vmul.f32 %v826_v60, %v424_v52 }
  0x7b   :  { %v832_v10 = vpop.eup %831  ;;  %v472_v18 = vstv %s1309_s9  ;;  %v394_v19 = vadd.f32 %v393_v2, %v330_v1  ;;  %v457_v20 = vmul.f32 %v830_v3, %v456_v5  ;;  %v314_v28 = vadd.f32 %v313_v4, %v250_v21 }
  0x7c   :  { %v834_v14 = vpop.eup %833  ;;  %847 = vrcp.f32 %v549_v6  ;;  %v377_v32 = vmul.f32 %v832_v10, %v376_v9  ;;  %v488_v33 = vstv %s1312_s2  ;;  %v520_v0 = vstv %s1314_s10 }
  0x7d   :  { %v836_v11 = vpop.eup %835  ;;  %v410_v41 = vadd.f32 %v409_v25, %v346_v13  ;;  %v440_v23 = vstv %s1318_s11  ;;  %v473_v24 = vmul.f32 %v834_v14, %v472_v18  ;;  %v426_v34 = vadd.f32 %v425_v17, %v362_v15 }
  0x7e   :  { %v838_v27 = vpop.eup %837  ;;  %v458_v35 = vadd.f32 %v457_v20, %v394_v19  ;;  %v489_v31 = vmul.f32 %v836_v11, %v488_v33  ;;  %v378_v46 = vadd.f32 %v377_v32, %v314_v28  ;;  %v536_v37 = vstv %s1323_s12 }
  0x7f   :  { %v840_v30 = vpop.eup %839  ;;  %v565_v26 = vadd.f32 1.0, %v838_v27  ;;  %v474_v47 = vadd.f32 %v473_v24, %v410_v41  ;;  %v504_v38 = vstv %s1326_s16  ;;  %v552_v44 = vstv %s1329_s18 }
  0x80   :  { %v842_v29 = vpop.eup %841  ;;  %v441_v7 = vmul.f32 %v840_v30, %v440_v23  ;;  %v490_v45 = vadd.f32 %v489_v31, %v426_v34  ;;  %v568_v58 = vstv %s717_s19  ;;  %v575_v63 = vstv %s1355_s3 }
  0x81   :  { %v521_v57 = vmul.f32 %v842_v29, %v520_v0  ;;  %849 = vrcp.f32 %v565_v26 }
  0x82   :  { %v844_v39 = vpop.eup %843  ;;  %v442_v43 = vadd.f32 %v441_v7, %v378_v46 }
  0x83   :  { %v522_v49 = vadd.f32 %v521_v57, %v458_v35  ;;  %v505_v50 = vmul.f32 %v844_v39, %v504_v38 }
  0x84   :  { %v846_v42 = vpop.eup %845 }
  0x85   :  { %v537_v53 = vmul.f32 %v846_v42, %v536_v37  ;;  %v506_v48 = vadd.f32 %v505_v50, %v442_v43 }
  0x86   :  { %v848_v22 = vpop.eup %847 }
  0x87   :  { %v538_v54 = vadd.f32 %v537_v53, %v474_v47  ;;  %v553_v59 = vmul.f32 %v848_v22, %v552_v44 }
  0x89   :  { %v554_v40 = vadd.f32 %v553_v59, %v490_v45  ;;  %v571_v36 = vadd.f32 %v538_v54, %v522_v49 }
  0x8b   :  { %v850_v51 = vpop.eup %849  ;;  %v572_v12 = vadd.f32 %v571_v36, %v554_v40 }
  0x8c   :  { %v569_v8 = vmul.f32 %v850_v51, %v568_v58 }
  0x8e   :  { %v570_v55 = vadd.f32 %v569_v8, %v506_v48 }
  0x90   :  { %v573_v60 = vadd.f32 %v572_v12, %v570_v55 }
  0x92   :  { %v576_v61 = vadd.f32 %v575_v63, %v573_v60 }
  0x94   :  { %577 = vst [vmem:[#allocation9] sm:$0x1] %v576_v61 }
  0x95   :  { %898 = shalt.err (!%p895_p5)
}
  0x96   :  { %s899_s28 = scalar_lea.hbm %s1357_s5, 16 }
  0x97   :  { %p900_p6 = scmp.ne.s32.totalorder %s1357_s5, %s899_s28  ;;  %p903_p7 = scmp.lt.u32.totalorder %s899_s28, %s1357_s5 }
  0x99   :  { %p905_p8 = pnand %p903_p7, %p900_p6 }
  0x9b   :  { %908 = shalt.err (!%p905_p8)
}
  0x9c   :  { %587 = dma.vmem_to_hbm [thread:$0]  %s585_s24, 16, %s1357_s5, [#allocation4]  }
  0x9d   :  { %913 = dma.done.wait [#allocation4], 16  }
  0x9e   :  { %914 = vsyncadd [#allocation4], 4294967280 }
  0x9f   :  { %591 = vsyncpa [#allocation4], 1 }
  0xa0   :  { %592 = vsyncpa [#allocation5], 1 }
  0xa1   :  { %593 = vsyncpa [#allocation7], 1 }

</bundles_post_ra>
